<compile_context>
chip_gen: v5e
topology: v5e:2x2
jax: 0.10.0
libtpu: 0.0.40
codegen_flags: <defaults>
</compile_context>

<pallas_src>
import functools

import jax
import jax.numpy as jnp
from jax.experimental import pallas as pl
from jax.experimental.pallas import tpu as pltpu

_LANE = 128
_SUB = 8


def _cdiv(a, b):
    return (a + b - 1) // b


def _tversky_partial_kernel(x_ref, t_ref, tp_ref, sx_ref, *,
                            num_classes, t_s, chunk, s_valid):
    """Lane-dense (8,128) partial sums of tp = sum(x*onehot(t)) and sum_x = sum(x).

    x_ref: (1, C, t_s, 128) block of probabilities (any float dtype).
    t_ref: (1, 1, t_s, 128) block of class ids (int8/int32).
    Rows of the final, partial tile that fall past the real array extent hold
    garbage (no wrapper padding) and are masked out of BOTH accumulators.
    """
    s_id = pl.program_id(1)
    # Rows of this tile that are inside the real array (>= t_s except on the last tile).
    valid_rows = s_valid - s_id * t_s
    row_iota = jax.lax.broadcasted_iota(jnp.int32, (chunk, _LANE), 0)   # hoisted
    n_chunks = t_s // chunk

    def chunk_body(j, carry):
        tp_acc, sx_acc = carry
        row0 = pl.multiple_of(j * chunk, chunk)
        # Per-chunk label load / upcast (a few vregs, dead at end of the chunk).
        t_c = t_ref[0, 0, pl.ds(row0, chunk), :].astype(jnp.int32)
        mask = (row_iota + j * chunk) < valid_rows

        def add_class(c, acc):
            tp_a, sx_a = acc
            xc = x_ref[0, c, pl.ds(row0, chunk), :].astype(jnp.float32)
            xc = jnp.where(mask, xc, 0.0)            # mask garbage tail rows
            tp_a = tp_a + jnp.where(t_c == c, xc, 0.0)
            return tp_a, sx_a + xc

        if num_classes <= 32:
            for c in range(num_classes):             # small C: full unroll (VPU only)
                tp_acc, sx_acc = add_class(c, (tp_acc, sx_acc))
        else:                                        # large C: bounded live ranges
            tp_acc, sx_acc = jax.lax.fori_loop(
                0, num_classes, add_class, (tp_acc, sx_acc), unroll=4)
        return tp_acc, sx_acc

    init = (jnp.zeros((chunk, _LANE), jnp.float32),
            jnp.zeros((chunk, _LANE), jnp.float32))
    tp_acc, sx_acc = jax.lax.fori_loop(0, n_chunks, chunk_body, init,
                                       unroll=min(2, n_chunks))

    # Fold (chunk,128) -> (8,128) with sublane-aligned slice adds (no XLU, no SMEM).
    tp8, sx8 = tp_acc[0:_SUB], sx_acc[0:_SUB]
    for j in range(1, chunk // _SUB):
        tp8 = tp8 + tp_acc[_SUB * j:_SUB * (j + 1)]
        sx8 = sx8 + sx_acc[_SUB * j:_SUB * (j + 1)]
    tp_ref[0, 0] = tp8
    sx_ref[0, 0] = sx8


def tversky_loss(inputs, targets, alpha=0.5, beta=0.5, smooth=1.0,
                 max_x_block_bytes=4 * 1024 * 1024):
    """inputs: (N, C, H, W) float probabilities (f32 or bf16); targets: (N, H, W) ints.

    Assumes all labels are in [0, C-1] (same requirement as F.one_hot); an "ignore"
    label such as 255 is out of spec for the reference module too.
    """
    N, C, H, W = inputs.shape
    HW = H * W
    itemsize = jnp.dtype(inputs.dtype).itemsize

    # ---- spatial tiling: HW -> (S rows x 128 lanes); t_s rows per grid step ---------
    s_raw = _cdiv(HW, _LANE)
    ts_budget = max(32, (max_x_block_bytes // (C * _LANE * itemsize)) // 32 * 32)
    if s_raw >= 32:
        t_s = min(ts_budget, s_raw // 32 * 32)
        # Aim for >= ~8 total grid steps so megacore sharding (v7x) and the
        # double-buffered pipeline both engage.
        want_s_steps = _cdiv(8, N)
        if want_s_steps > 1:
            t_s = min(t_s, max(32, _cdiv(s_raw, want_s_steps) // 32 * 32))
        chunk = 32
        s_arr = s_raw            # no S padding; partial tail tile is masked in-kernel
    elif s_raw >= 8:
        t_s = s_raw // 8 * 8
        chunk = 8
        s_arr = s_raw
    else:
        t_s = _SUB               # tiny spatial extent: pad up to one 8-row tile
        chunk = _SUB
        s_arr = _SUB
    grid_s = _cdiv(s_arr, t_s)

    # int8 label stream only when representable and tile-aligned; labels >= 128 would
    # silently wrap, so fall back to int32 otherwise.
    t_dtype = jnp.int8 if (C <= 127 and t_s % 32 == 0) else jnp.int32

    x = inputs.reshape(N, C, HW)
    t = targets.reshape(N, 1, HW).astype(t_dtype)
    pad = s_arr * _LANE - HW
    if pad:
        # Lane-tail (HW % 128) / tiny-spatial padding: x pads with 0, labels with -1,
        # so padded pixels contribute nothing to tp or sum_x.
        # TODO(synk): the lane-tail pad still rewrites x once in HBM when HW%128 != 0;
        # avoiding it entirely needs a flat layout with in-kernel lane masking.
        x = jnp.pad(x, ((0, 0), (0, 0), (0, pad)))
        t = jnp.pad(t, ((0, 0), (0, 0), (0, pad)), constant_values=-1)
    x = x.reshape(N, C, s_arr, _LANE)
    t = t.reshape(N, 1, s_arr, _LANE)

    kernel = functools.partial(_tversky_partial_kernel, num_classes=C,
                               t_s=t_s, chunk=chunk, s_valid=s_arr)
    part_shape = jax.ShapeDtypeStruct((N, grid_s, _SUB, _LANE), jnp.float32)
    part_spec = pl.BlockSpec((1, 1, _SUB, _LANE), lambda n, s: (n, s, 0, 0))

    tp_parts, sx_parts = pl.pallas_call(
        kernel,
        out_shape=(part_shape, part_shape),
        grid_spec=pltpu.PrefetchScalarGridSpec(
            num_scalar_prefetch=0,
            grid=(N, grid_s),
            in_specs=[
                pl.BlockSpec((1, C, t_s, _LANE), lambda n, s: (n, 0, s, 0)),
                pl.BlockSpec((1, 1, t_s, _LANE), lambda n, s: (n, 0, s, 0)),
            ],
            out_specs=[part_spec, part_spec],
        ),
        compiler_params=pltpu.CompilerParams(
            dimension_semantics=("parallel", "parallel"),
            vmem_limit_bytes=32 * 1024 * 1024,
        ),
    )(x, t)

    # Tiny final reduction + Tversky formula in plain JAX.
    tp = jnp.sum(tp_parts)
    sum_x = jnp.sum(sx_parts)
    num_pixels = jnp.float32(N * HW)
    fn = num_pixels - tp          # sum(onehot) == num real pixels (labels in [0, C-1])
    fp = sum_x - tp
    tversky = (tp + smooth) / (tp + alpha * fn + beta * fp + smooth)
    return 1.0 - tversky


def tversky_loss_ref(inputs, targets, alpha=0.5, beta=0.5, smooth=1.0):
    """Plain-JAX reference mirroring the PyTorch forward exactly."""
    C = inputs.shape[1]
    onehot = jax.nn.one_hot(targets, C, dtype=jnp.float32)            # (N,H,W,C)
    onehot = jnp.transpose(onehot, (0, 3, 1, 2))                      # (N,C,H,W)
    x = inputs.astype(jnp.float32).reshape(-1)
    tgt = onehot.reshape(-1)
    tp = jnp.sum(x * tgt)
    fn = jnp.sum(tgt * (1.0 - x))
    fp = jnp.sum((1.0 - tgt) * x)
    return 1.0 - (tp + smooth) / (tp + alpha * fn + beta * fp + smooth)


if __name__ == "__main__":
    key = jax.random.PRNGKey(0)

    def _check(n, c, h, w, k):
        k1, k2 = jax.random.split(k)
        logits = jax.random.normal(k1, (n, c, h, w), dtype=jnp.float32)
        probs = jax.nn.softmax(logits, axis=1)      # per-pixel class probabilities
        tgts = jax.random.randint(k2, (n, h, w), 0, c, dtype=jnp.int32)
        got = jax.block_until_ready(tversky_loss(probs, tgts))
        want = tversky_loss_ref(probs, tgts)
        assert jnp.allclose(got, want, atol=1e-5, rtol=1e-5), (n, c, h, w, got, want)

    k0, k1, k2 = jax.random.split(key, 3)
    _check(2, 4, 16, 16, k0)    # primary shape (tiny spatial -> single padded tile)
    _check(1, 3, 40, 40, k1)    # mid branch: unpadded partial tail tile, masked in-kernel
    _check(1, 3, 72, 72, k2)    # 32-row chunks, int8 label stream, masked tail tile

    print("KERNEL_OK")
</pallas_src>

<mosaic_0001>
module attributes {stable_mosaic.version = 11 : i64} {
  func.func @_tversky_partial_kernel(%arg0: i32, %arg1: i32, %arg2: memref<1x4x8x128xf32, #tpu.memory_space<vmem>>, %arg3: memref<1x1x8x128xi32, #tpu.memory_space<vmem>>, %arg4: memref<1x1x8x128xf32, #tpu.memory_space<vmem>>, %arg5: memref<1x1x8x128xf32, #tpu.memory_space<vmem>>) attributes {dimension_semantics = [#tpu.dimension_semantics<parallel>, #tpu.dimension_semantics<parallel>], iteration_bounds = array<i64: 2, 1>, scalar_prefetch = 0 : i64, scratch_operands = 0 : i64, tpu.core_type = #tpu.core_type<tc>, window_params = [{transform_indices = @transform_0, window_bounds = array<i64: 1, 4, 8, 128>}, {transform_indices = @transform_1, window_bounds = array<i64: 1, 1, 8, 128>}, {transform_indices = @transform_2, window_bounds = array<i64: 1, 1, 8, 128>}, {transform_indices = @transform_3, window_bounds = array<i64: 1, 1, 8, 128>}]} {
    %c8_i32 = arith.constant 8 : i32
    %0 = arith.muli %arg1, %c8_i32 : i32
    %c8_i32_0 = arith.constant 8 : i32
    %1 = arith.subi %c8_i32_0, %0 : i32
    %2 = tpu.iota {dimensions = array<i32: 0>} : vector<8x128xi32>
    %cst = arith.constant 0.000000e+00 : f32
    %3 = vector.broadcast %cst : f32 to vector<8x128xf32>
    %cst_1 = arith.constant 0.000000e+00 : f32
    %4 = vector.broadcast %cst_1 : f32 to vector<8x128xf32>
    %c0_i32 = arith.constant 0 : i32
    %c8_i32_2 = arith.constant 8 : i32
    %5 = arith.muli %c0_i32, %c8_i32_2 : i32
    %6 = tpu.assume_multiple %5, 8 : i32
    %c0 = arith.constant 0 : index
    %c0_3 = arith.constant 0 : index
    %7 = arith.index_cast %6 : i32 to index
    %c0_4 = arith.constant 0 : index
    %8 = vector.load %arg3[%c0, %c0_3, %7, %c0_4] : memref<1x1x8x128xi32, #tpu.memory_space<vmem>>, vector<1x1x8x128xi32>
    %9 = vector.shape_cast %8 : vector<1x1x8x128xi32> to vector<8x128xi32>
    %c8_i32_5 = arith.constant 8 : i32
    %10 = arith.muli %c0_i32, %c8_i32_5 : i32
    %11 = vector.broadcast %10 : i32 to vector<8x128xi32>
    %12 = arith.addi %2, %11 : vector<8x128xi32>
    %13 = vector.broadcast %1 : i32 to vector<8x128xi32>
    %14 = arith.cmpi slt, %12, %13 : vector<8x128xi32>
    %c0_6 = arith.constant 0 : index
    %c0_7 = arith.constant 0 : index
    %15 = arith.index_cast %6 : i32 to index
    %c0_8 = arith.constant 0 : index
    %16 = vector.load %arg2[%c0_6, %c0_7, %15, %c0_8] : memref<1x4x8x128xf32, #tpu.memory_space<vmem>>, vector<1x1x8x128xf32>
    %17 = vector.shape_cast %16 : vector<1x1x8x128xf32> to vector<8x128xf32>
    %cst_9 = arith.constant 0.000000e+00 : f32
    %18 = vector.broadcast %cst_9 : f32 to vector<8x128xf32>
    %19 = arith.select %14, %17, %18 : vector<8x128xi1>, vector<8x128xf32>
    %c0_i32_10 = arith.constant 0 : i32
    %20 = vector.broadcast %c0_i32_10 : i32 to vector<8x128xi32>
    %21 = arith.cmpi eq, %9, %20 : vector<8x128xi32>
    %cst_11 = arith.constant 0.000000e+00 : f32
    %22 = vector.broadcast %cst_11 : f32 to vector<8x128xf32>
    %23 = arith.select %21, %19, %22 : vector<8x128xi1>, vector<8x128xf32>
    %24 = arith.addf %3, %23 : vector<8x128xf32>
    %25 = arith.addf %4, %19 : vector<8x128xf32>
    %c0_12 = arith.constant 0 : index
    %c1 = arith.constant 1 : index
    %26 = arith.index_cast %6 : i32 to index
    %c0_13 = arith.constant 0 : index
    %27 = vector.load %arg2[%c0_12, %c1, %26, %c0_13] : memref<1x4x8x128xf32, #tpu.memory_space<vmem>>, vector<1x1x8x128xf32>
    %28 = vector.shape_cast %27 : vector<1x1x8x128xf32> to vector<8x128xf32>
    %cst_14 = arith.constant 0.000000e+00 : f32
    %29 = vector.broadcast %cst_14 : f32 to vector<8x128xf32>
    %30 = arith.select %14, %28, %29 : vector<8x128xi1>, vector<8x128xf32>
    %c1_i32 = arith.constant 1 : i32
    %31 = vector.broadcast %c1_i32 : i32 to vector<8x128xi32>
    %32 = arith.cmpi eq, %9, %31 : vector<8x128xi32>
    %cst_15 = arith.constant 0.000000e+00 : f32
    %33 = vector.broadcast %cst_15 : f32 to vector<8x128xf32>
    %34 = arith.select %32, %30, %33 : vector<8x128xi1>, vector<8x128xf32>
    %35 = arith.addf %24, %34 : vector<8x128xf32>
    %36 = arith.addf %25, %30 : vector<8x128xf32>
    %c0_16 = arith.constant 0 : index
    %c2 = arith.constant 2 : index
    %37 = arith.index_cast %6 : i32 to index
    %c0_17 = arith.constant 0 : index
    %38 = vector.load %arg2[%c0_16, %c2, %37, %c0_17] : memref<1x4x8x128xf32, #tpu.memory_space<vmem>>, vector<1x1x8x128xf32>
    %39 = vector.shape_cast %38 : vector<1x1x8x128xf32> to vector<8x128xf32>
    %cst_18 = arith.constant 0.000000e+00 : f32
    %40 = vector.broadcast %cst_18 : f32 to vector<8x128xf32>
    %41 = arith.select %14, %39, %40 : vector<8x128xi1>, vector<8x128xf32>
    %c2_i32 = arith.constant 2 : i32
    %42 = vector.broadcast %c2_i32 : i32 to vector<8x128xi32>
    %43 = arith.cmpi eq, %9, %42 : vector<8x128xi32>
    %cst_19 = arith.constant 0.000000e+00 : f32
    %44 = vector.broadcast %cst_19 : f32 to vector<8x128xf32>
    %45 = arith.select %43, %41, %44 : vector<8x128xi1>, vector<8x128xf32>
    %46 = arith.addf %35, %45 : vector<8x128xf32>
    %47 = arith.addf %36, %41 : vector<8x128xf32>
    %c0_20 = arith.constant 0 : index
    %c3 = arith.constant 3 : index
    %48 = arith.index_cast %6 : i32 to index
    %c0_21 = arith.constant 0 : index
    %49 = vector.load %arg2[%c0_20, %c3, %48, %c0_21] : memref<1x4x8x128xf32, #tpu.memory_space<vmem>>, vector<1x1x8x128xf32>
    %50 = vector.shape_cast %49 : vector<1x1x8x128xf32> to vector<8x128xf32>
    %cst_22 = arith.constant 0.000000e+00 : f32
    %51 = vector.broadcast %cst_22 : f32 to vector<8x128xf32>
    %52 = arith.select %14, %50, %51 : vector<8x128xi1>, vector<8x128xf32>
    %c3_i32 = arith.constant 3 : i32
    %53 = vector.broadcast %c3_i32 : i32 to vector<8x128xi32>
    %54 = arith.cmpi eq, %9, %53 : vector<8x128xi32>
    %cst_23 = arith.constant 0.000000e+00 : f32
    %55 = vector.broadcast %cst_23 : f32 to vector<8x128xf32>
    %56 = arith.select %54, %52, %55 : vector<8x128xi1>, vector<8x128xf32>
    %57 = arith.addf %46, %56 : vector<8x128xf32>
    %58 = arith.addf %47, %52 : vector<8x128xf32>
    %c1_i32_24 = arith.constant 1 : i32
    %c0_25 = arith.constant 0 : index
    %c0_26 = arith.constant 0 : index
    %c0_27 = arith.constant 0 : index
    %c0_28 = arith.constant 0 : index
    %59 = vector.load %arg4[%c0_25, %c0_26, %c0_27, %c0_28] : memref<1x1x8x128xf32, #tpu.memory_space<vmem>>, vector<1x1x8x128xf32>
    %60 = vector.shape_cast %59 : vector<1x1x8x128xf32> to vector<8x128xf32>
    %61 = vector.shape_cast %57 : vector<8x128xf32> to vector<1x1x8x128xf32>
    tpu.vector_store %arg4[%c0_25, %c0_26, %c0_27, %c0_28], %61 {strides = array<i32>} : memref<1x1x8x128xf32, #tpu.memory_space<vmem>>, vector<1x1x8x128xf32>,
    %c0_29 = arith.constant 0 : index
    %c0_30 = arith.constant 0 : index
    %c0_31 = arith.constant 0 : index
    %c0_32 = arith.constant 0 : index
    %62 = vector.load %arg5[%c0_29, %c0_30, %c0_31, %c0_32] : memref<1x1x8x128xf32, #tpu.memory_space<vmem>>, vector<1x1x8x128xf32>
    %63 = vector.shape_cast %62 : vector<1x1x8x128xf32> to vector<8x128xf32>
    %64 = vector.shape_cast %58 : vector<8x128xf32> to vector<1x1x8x128xf32>
    tpu.vector_store %arg5[%c0_29, %c0_30, %c0_31, %c0_32], %64 {strides = array<i32>} : memref<1x1x8x128xf32, #tpu.memory_space<vmem>>, vector<1x1x8x128xf32>,
    return
  }
  func.func @transform_0(%arg0: i32, %arg1: i32) -> (i32, i32, i32, i32) {
    %c0_i32 = arith.constant 0 : i32
    %c0_i32_0 = arith.constant 0 : i32
    %c0_i32_1 = arith.constant 0 : i32
    return %arg0, %c0_i32, %arg1, %c0_i32_0 : i32, i32, i32, i32
  }
  func.func @transform_1(%arg0: i32, %arg1: i32) -> (i32, i32, i32, i32) {
    %c0_i32 = arith.constant 0 : i32
    %c0_i32_0 = arith.constant 0 : i32
    %c0_i32_1 = arith.constant 0 : i32
    return %arg0, %c0_i32, %arg1, %c0_i32_0 : i32, i32, i32, i32
  }
  func.func @transform_2(%arg0: i32, %arg1: i32) -> (i32, i32, i32, i32) {
    %c0_i32 = arith.constant 0 : i32
    %c0_i32_0 = arith.constant 0 : i32
    %c0_i32_1 = arith.constant 0 : i32
    return %arg0, %arg1, %c0_i32, %c0_i32_0 : i32, i32, i32, i32
  }
  func.func @transform_3(%arg0: i32, %arg1: i32) -> (i32, i32, i32, i32) {
    %c0_i32 = arith.constant 0 : i32
    %c0_i32_0 = arith.constant 0 : i32
    %c0_i32_1 = arith.constant 0 : i32
    return %arg0, %arg1, %c0_i32, %c0_i32_0 : i32, i32, i32, i32
  }
}

</mosaic_0001>

<bundles_post_ra>
// kernel: tpu_custom_call.1
= control target key start
LH: loop header
LB: loop body
LE: loop exit
PB: predicated region body
PF: predicated region fallthrough
CT: control target
= control target key end

     0   :  { %9 = vsyncpa [#allocation3], 0  ;;  %s950_s0 = inlined_call_operand.hbm [shape: f32[2,4,8,128], index: 0, kind: input, shape index: {}]   ;;  %s951_s1 = inlined_call_operand.hbm [shape: s32[2,1,8,128], index: 1, kind: input, shape index: {}]   ;;  %s952_s2 = inlined_call_operand.hbm [shape: f32[2,1,8,128], index: 2, kind: output, shape index: {0}]   ;;  %s953_s3 = inlined_call_operand.hbm [shape: f32[2,1,8,128], index: 3, kind: output, shape index: {1}]  }
   0x1   :  { %11 = vsyncpa [#allocation3 + $0x1], 0 }
   0x2   :  { %12 = vsyncpa [#allocation6], 0 }
   0x3   :  { %14 = vsyncpa [#allocation6 + $0x1], 0 }
   0x4   :  { %15 = vsyncpa [#allocation4], 0 }
   0x5   :  { %17 = vsyncpa [#allocation4 + $0x1], 0 }
   0x6   :  { %18 = vsyncpa [#allocation9], 0 }
   0x7   :  { %20 = vsyncpa [#allocation9 + $0x1], 0  ;;  %s781_s12 = smov 0   ;;  %s783_s13 = smov 0  }
   0x8   :  { %s785_s14 = smov 0   ;;  %s787_s15 = smov 0  }
   0x9   :  { %s789_s16 = smov 0   ;;  %s791_s17 = smov 0  }
   0xa LB: > { %s481_s18 = sadd.s32 4294967295, %s757_s17   ;;  %s482_s19 = sadd.s32 4294967294, %s757_s17   ;;  %s757_s17 = sphi %s791_s17, %s26_s17   ;;  %s753_s16 = sphi %s789_s16, %s963_s16   ;;  %s749_s15 = sphi %s787_s15, %s962_s15   ;;  %s745_s14 = sphi %s785_s14, %s961_s14   ;;  %s741_s13 = sphi %s783_s13, %s960_s13   ;;  %s737_s12 = sphi %s781_s12, %s959_s12  }
   0xb   : > { %s38_s20 = sadd.s32 1, %s753_s16  ;;  %s47_s21 = sadd.s32 1, %s745_s14 }
   0xc   : > { %p40_p0 = scmp.ge.s32.totalorder %s38_s20, 2  ;;  %p54_p1 = scmp.ne.s32.totalorder %s745_s14, %s741_s13 }
   0xd   : > { %p55_p2 = scmp.eq.s32.totalorder %s757_s17, 0  ;;  %p60_p3 = scmp.ne.s32.totalorder %s741_s13, %s737_s12 }
   0xe   : > { %s965_s20 = smov (%p40_p0, %s38_s20), 0  ;;  %p61_p5 = scmp.eq.s32.totalorder %s481_s18, 0 }
   0xf   : > { %p822_p4 = por %p55_p2, %p54_p1  ;;  %s42_s23 = ssub.s32 %s753_s16, %s965_s20 }
  0x10   : > { %p114_p6 = scmp.eq.s32.totalorder %s481_s18, 1  ;;  %p45_p7 = scmp.eq.s32.totalorder %s42_s23, 0 }
  0x11   : > { %p828_p8 = por %p61_p5, %p60_p3  ;;  %p120_p10 = scmp.eq.s32.totalorder %s482_s19, 1 }
  0x12   : > { %p832_p9 = por %p114_p6, %p54_p1  ;;  %p484_p12 = scmp.ge.s32.totalorder %s757_s17, 2 }
  0x13   : > { %s837_s26 = scalar_select %p45_p7, %s745_s14, %s47_s21  }
  0x14   : > { %p839_p11 = por %p120_p10, %p60_p3  ;;  %p527_p13 = scmp.lt.s32.totalorder %s757_s17, 2 }
  0x15   : > { %s168_s28 = sand.u32 1, %s745_s14   ;;  %s504_s30 = sshll.u32 %s753_s16, 5 }
  0x16   : > { %s485_s29 = sshll.u32 %s168_s28, 5  ;;  %s178_s6 = scalar_lea.hbm %s950_s0, %s504_s30 }
  0x17   : > { %s172_s7 = scalar_lea.vmem [#allocation2], %s485_s29  ;;  %s179_s9 = sshll.u32 %s178_s6, 4  ;;  %s180_s9 = int_to_ptr.hbm [resolvable:$true] %s179_s9 }
  0x18   : > { %s181_s8 = sshll.u32 %s172_s7, 4  ;;  %p852_p0 = pnand %p527_p13, %p822_p4  ;;  %s182_s8 = int_to_ptr.vmem [resolvable:$true] %s181_s8 }
  0x19   : > { %p490_p1 = scmp.ge.s32.totalorder %s757_s17, 1  ;;  %s169_s11 = scalar_lea.sflag [#allocation3], %s168_s28 }
  0x1a   : > { %s759_s18 = smov 128   ;;  %s760_s19 = smov 8  }
  0x1b   : > { %516 = dma.hbm_to_vmem [thread:$0]  (!%p852_p0), %s180_s9, 512, %s182_s8, %s169_s11, %s759_s18, %s759_s18, %s760_s19  }
  0x1c   : > { %p209_p2 = scmp.lt.s32.totalorder %s757_s17, 3  ;;  %s488_s21 = sshll.u32 %s168_s28, 3 }
  0x1d   : > { %s489_s23 = sshll.u32 %s753_s16, 3  ;;  %s195_s4 = scalar_lea.vmem [#allocation5], %s488_s21 }
  0x1e   : > { %p210_p3 = pnand %p490_p1, %p209_p2  ;;  %s200_s22 = scalar_lea.hbm %s951_s1, %s489_s23 }
  0x1f   : > { %s204_s5 = sshll.u32 %s195_s4, 4  ;;  %s202_s6 = sshll.u32 %s200_s22, 4  ;;  %s205_s5 = int_to_ptr.vmem [resolvable:$true] %s204_s5  ;;  %s203_s6 = int_to_ptr.hbm [resolvable:$true] %s202_s6 }
  0x20   : > { %s192_s7 = scalar_lea.sflag [#allocation6], %s168_s28  ;;  %213 = sbr.rel (%p210_p3) target bundleno = 70 (0x46), region = 28 }
  0x21   : > { %519 = dma.hbm_to_vmem [thread:$0]  (!%p852_p0), %s203_s6, 128, %s205_s5, %s192_s7  }
  0x22   : > { %s867_s8 = sand.u32 (!%p210_p3), 1, %s741_s13  }
  0x23   : > { %s491_s9 = sshll.u32 (!%p210_p3), %s867_s8, 5  ;;  %s216_s11 = scalar_lea.sflag (!%p210_p3), [#allocation3], %s867_s8 }
  0x24   : > { %s219_s18 = scalar_lea.vmem (!%p210_p3), [#allocation2], %s491_s9 }
  0x25   : > { %720 = dma.done.wait (%p828_p8), %s216_s11, 512  }
  0x26   : > { %722 = vsyncadd (%p828_p8), %s216_s11, 4294966784  ;;  %s876_s28 = sshll.u32 %s867_s8, 3  ;;  %s226_s10 = scalar_lea.sflag [#allocation6], %s867_s8 }
  0x27   : > { %s229_s19 = scalar_lea.vmem [#allocation5], %s876_s28 }
  0x28   : > { %724 = dma.done.wait (%p828_p8), %s226_s10, 128  }
  0x29   : > { %726 = vsyncadd (%p828_p8), %s226_s10, 4294967168  ;;  %s500_s21 = sshll.u32 %s749_s15, 3  ;;  %v267_v0 = vld [vmem:[%s229_s19] sm:$0xff]  ;;  %v496_v3 = vld [vmem:[%s219_s18 + $0x10] sm:$0xff]  ;;  %s255_s4 = scalar_lea.vmem [#allocation7], %s876_s28 }
  0x2a   : > { %v270_v1 = vld [vmem:[%s219_s18] sm:$0xff]  ;;  %v495_v2 = vld [vmem:[%s219_s18 + $0x8] sm:$0xff]  ;;  %vm272_vm0 = vcmp.eq.s32.totalorder %v267_v0, 0  ;;  %vm280_vm1 = vcmp.eq.s32.totalorder %v267_v0, 1  ;;  %vm288_vm2 = vcmp.eq.s32.totalorder %v267_v0, 2  ;;  %v497_v4 = vld [vmem:[%s219_s18 + $0x18] sm:$0xff]  ;;  %s319_s30 = scalar_lea.hbm %s952_s2, %s500_s21  ;;  %s334_s22 = scalar_lea.hbm %s953_s3, %s500_s21 }
  0x2b   : > { %vm296_vm3 = vcmp.eq.s32.totalorder %v267_v0, 3  ;;  %v273_v5 = vsel %vm272_vm0, %v270_v1, 0.0  ;;  %v281_v6 = vsel %vm280_vm1, %v495_v2, 0.0  ;;  %v289_v7 = vsel %vm288_vm2, %v496_v3, 0.0  ;;  %s892_s5 = sshll.u32 %s255_s4, 4  ;;  %s262_s6 = scalar_lea.vmem [#allocation8], %s876_s28  ;;  %s322_s5 = int_to_ptr.vmem [resolvable:$true] %s892_s5 }
  0x2c   : > { %v282_v8 = vadd.f32 %v281_v6, %v273_v5  ;;  %v283_v9 = vadd.f32 %v495_v2, %v270_v1  ;;  %s895_s7 = sshll.u32 %s262_s6, 4  ;;  %v297_v10 = vsel %vm296_vm3, %v497_v4, 0.0  ;;  %s323_s9 = sshll.u32 %s319_s30, 4  ;;  %s337_s7 = int_to_ptr.vmem [resolvable:$true] %s895_s7  ;;  %s324_s9 = int_to_ptr.hbm [resolvable:$true] %s323_s9 }
  0x2d   : > { %s338_s11 = sshll.u32 %s334_s22, 4  ;;  %s303_s18 = scalar_lea.sflag [#allocation4], %s867_s8  ;;  %s899_s11 = int_to_ptr.hbm [resolvable:$true] %s338_s11 }
  0x2e   : > { %v290_v11 = vadd.f32 %v289_v7, %v282_v8  ;;  %v291_v12 = vadd.f32 %v496_v3, %v283_v9  ;;  %s653_s28 = sshra.s32 %s324_s9, 4  ;;  %s659_s23 = scalar_lea.hbm %s952_s2, 16  ;;  %s654_s28 = int_to_ptr.hbm [resolvable:$true] %s653_s28 }
  0x2f   : > { %s655_s10 = scalar_lea.hbm %s654_s28, 8  ;;  %p660_p7 = scmp.lt.s32.totalorder %s654_s28, %s952_s2 }
  0x30   : > { %v298_v13 = vadd.f32 %v297_v10, %v290_v11  ;;  %v299_v14 = vadd.f32 %v497_v4, %v291_v12  ;;  %p656_p4 = scmp.ne.s32.totalorder %s654_s28, %s655_s10  ;;  %p661_p8 = scmp.lt.s32.totalorder %s659_s23, %s655_s10 }
  0x32   : > { %300 = vst [vmem:[%s255_s4] sm:$0xff] %v298_v13  ;;  %p657_p5 = pnand %p656_p4, %p832_p9  ;;  %p662_p10 = por %p661_p8, %p660_p7 }
  0x33   : > { %301 = vst [vmem:[%s262_s6] sm:$0xff] %v299_v14 }
  0x34   : > { %p658_p6 = pneg %p657_p5 }
  0x36   : > { %p663_p13 = pnand %p662_p10, %p658_p6 }
  0x38   : > { %666 = shalt.err (!%p663_p13)
}
  0x39   : > { %509 = dma.vmem_to_hbm [thread:$0]  (%p832_p9), %s322_s5, 128, %s324_s9, %s303_s18  }
  0x3a   : > { %s308_s24 = scalar_lea.sflag [#allocation9], %s867_s8  ;;  %s681_s15 = sshra.s32 %s899_s11, 4  ;;  %s682_s15 = int_to_ptr.hbm [resolvable:$true] %s681_s15 }
  0x3b   : > { %s683_s22 = scalar_lea.hbm %s682_s15, 8  ;;  %s687_s28 = scalar_lea.hbm %s953_s3, 16 }
  0x3c   : > { %p684_p0 = scmp.ne.s32.totalorder %s682_s15, %s683_s22  ;;  %p688_p3 = scmp.lt.s32.totalorder %s682_s15, %s953_s3 }
  0x3d   : > { %p689_p4 = scmp.lt.s32.totalorder %s687_s28, %s683_s22 }
  0x3e   : > { %p685_p1 = pnand %p684_p0, %p832_p9 }
  0x3f   : > { %p690_p5 = por %p689_p4, %p688_p3 }
  0x40   : > { %p686_p2 = pneg %p685_p1 }
  0x42   : > { %p691_p6 = pnand %p690_p5, %p686_p2 }
  0x44   : > { %694 = shalt.err (!%p691_p6)
}
  0x45   : > { %510 = dma.vmem_to_hbm [thread:$0]  (%p832_p9), %s337_s7, 128, %s899_s11, %s308_s24  }
  0x46 PF: > { %s350_s8 = sand.u32 1, %s737_s12   ;;  %p521_p7 = pnand %p484_p12, %p839_p11 }
  0x47   : > { %s351_s5 = scalar_lea.sflag [#allocation4], %s350_s8 }
  0x48   : > { %p522_p8 = pneg %p521_p7 }
  0x4a   : > { %728 = dma.done.wait (%p522_p8), %s351_s5, 128  }
  0x4b   : > { %730 = vsyncadd (%p522_p8), %s351_s5, 4294967168  ;;  %s361_s9 = scalar_lea.sflag [#allocation9], %s350_s8 }
  0x4c   : > { %732 = dma.done.wait (%p522_p8), %s361_s9, 128  }
  0x4d   : > { %734 = vsyncadd (%p522_p8), %s361_s9, 4294967168  ;;  %s26_s17 = sadd.s32 1, %s757_s17   ;;  %s959_s12 = smov %s741_s13 }
  0x4e   : > { %p23_p10 = scmp.ge.s32.totalorder %s26_s17, 4   ;;  %s960_s13 = smov %s745_s14 }
  0x4f   : > { %s961_s14 = smov %s837_s26  ;;  %s962_s15 = smov %s753_s16 }
  0x50   : > { %s963_s16 = smov %s965_s20  ;;  %25 = sbr.rel (!%p23_p10) target bundleno = 10 (0xa), region = 106 }
  0x55   :  { %367 = vsyncpa [#allocation3], 1 }
  0x56   :  { %369 = vsyncpa [#allocation3 + $0x1], 1 }
  0x57   :  { %370 = vsyncpa [#allocation6], 1 }
  0x58   :  { %372 = vsyncpa [#allocation6 + $0x1], 1 }
  0x59   :  { %373 = vsyncpa [#allocation4], 1 }
  0x5a   :  { %375 = vsyncpa [#allocation4 + $0x1], 1 }
  0x5b   :  { %376 = vsyncpa [#allocation9], 1 }
  0x5c   :  { %378 = vsyncpa [#allocation9 + $0x1], 1 }

</bundles_post_ra>
